<compile_context>
chip_gen: v5e
topology: v5e:2x2
jax: 0.10.0
libtpu: 0.0.40
codegen_flags: <defaults>
</compile_context>

<pallas_src>
import jax
import jax.numpy as jnp
from jax.experimental import pallas as pl
from jax.experimental.pallas import tpu as pltpu

_LANES = 128                              # slab lane width; blocks span the full width
_TARGET_BLOCK_BYTES = 4 * 1024 * 1024     # ~4 MiB / block -> ~16 MiB double-buffered
_VMEM_LIMIT_BYTES = 32 * 1024 * 1024      # headroom over v5e's 16 MiB default scoped VMEM


def _linbp_act_kernel(x_ref, o_ref):
    x = x_ref[...]
    r = jnp.maximum(x, 0.0)            # act(x)
    x_linbp = r - x + x                # act(x).data - x.data + x    (forward value)
    x_out = r + x_linbp                # x_normal + x_linbp
    o_ref[...] = x_out - 0.5 * x_out   # x_out - 0.5 * x_out.data


def _sublane(dtype):
    itemsize = jnp.dtype(dtype).itemsize
    return {4: 8, 2: 16, 1: 32}.get(itemsize, 8)


def _round_up(x, m):
    return ((x + m - 1) // m) * m


def _pick_block_rows(rows, sub, cap_rows):
    """Largest multiple-of-`sub` divisor of `rows` that is <= cap_rows, giving a
    grid of >= 2 steps when possible (prefer an even step count for megacore).
    Returns None if no such divisor exists."""
    if rows < sub or rows % sub != 0:
        return None
    cap = rows // 2 if rows >= 2 * sub else rows
    cap = min(cap, cap_rows)
    cap = (cap // sub) * sub
    if cap < sub:
        return None
    best = None
    best_even = None
    for tr in range(cap, sub - 1, -sub):
        if rows % tr == 0:
            if best is None:
                best = tr
            if best_even is None and (rows // tr) % 2 == 0:
                best_even = tr
            if best is not None and best_even is not None:
                break
    if best is None:
        return None
    # Prefer an even grid count as long as it doesn't shrink the block too much.
    if best_even is not None and best_even * 2 >= best:
        return best_even
    return best


def linbp_act(x):
    """x: any-shape float array. Returns LinBPAct(ReLU) forward output, same shape."""
    orig_shape = x.shape
    dtype = x.dtype
    total = x.size
    itemsize = jnp.dtype(dtype).itemsize
    sub = _sublane(dtype)
    lanes = _LANES
    cap_rows = max(sub, (_TARGET_BLOCK_BYTES // (lanes * itemsize)) // sub * sub)

    flat = x.reshape(-1)
    pad = 0
    tr = None
    rows = None

    if total % lanes == 0:
        rows = total // lanes
        tr = _pick_block_rows(rows, sub, cap_rows)
        if tr is None and rows * lanes * itemsize <= 2 * _TARGET_BLOCK_BYTES:
            # Small input whose row count can't be tiled: one full-extent block
            # (block_shape == full array dims, so the (8,128) rule is waived).
            tr = rows

    if tr is None:
        # Rare fallback (total not a multiple of 128, or untileable large rows):
        # pad the flat array so every (tr, lanes) block is full.
        rows = pl.cdiv(total, lanes)
        tr = min(cap_rows, max(sub, _round_up(pl.cdiv(rows, 2), sub)))
        rows_padded = _round_up(rows, tr)
        pad = rows_padded * lanes - total
        flat = jnp.pad(flat, (0, pad))
        rows = rows_padded

    x2d = flat.reshape(rows, lanes)
    grid = (rows // tr,)

    out2d = pl.pallas_call(
        _linbp_act_kernel,
        out_shape=jax.ShapeDtypeStruct((rows, lanes), dtype),
        grid=grid,
        in_specs=[pl.BlockSpec((tr, lanes), lambda i: (i, 0))],
        out_specs=pl.BlockSpec((tr, lanes), lambda i: (i, 0)),
        compiler_params=pltpu.CompilerParams(
            dimension_semantics=("parallel",),   # lets v7x shard row blocks over its 2 TCs
            vmem_limit_bytes=_VMEM_LIMIT_BYTES,
        ),
        cost_estimate=pl.CostEstimate(
            flops=5 * total,
            transcendentals=0,
            bytes_accessed=2 * total * itemsize,
        ),
    )(x2d)

    out_flat = out2d.reshape(-1)
    if pad:
        out_flat = out_flat[:total]
    return out_flat.reshape(orig_shape)


if __name__ == "__main__":
    key = jax.random.PRNGKey(0)
    # Small NCHW input consistent with a conv-net activation: (batch=2, C=4, H=16, W=16)
    x = jax.random.normal(key, (2, 4, 16, 16), dtype=jnp.float32)

    out = linbp_act(x)
    out = jax.block_until_ready(out)

    # Reference: forward value of LinBPAct(ReLU) is relu(x) for finite inputs.
    ref = jnp.maximum(x, 0.0)
    assert out.shape == x.shape
    assert jnp.allclose(out, ref, atol=1e-6), "mismatch vs reference"

    print("KERNEL_OK")
</pallas_src>

<mosaic_0001>
module attributes {stable_mosaic.version = 11 : i64} {
  func.func @_linbp_act_kernel(%arg0: i32, %arg1: memref<8x128xf32, #tpu.memory_space<vmem>>, %arg2: memref<8x128xf32, #tpu.memory_space<vmem>>) attributes {dimension_semantics = [#tpu.dimension_semantics<parallel>], iteration_bounds = array<i64: 2>, scalar_prefetch = 0 : i64, scratch_operands = 0 : i64, tpu.core_type = #tpu.core_type<tc>, window_params = [{transform_indices = @transform_0, window_bounds = array<i64: 8, 128>}, {transform_indices = @transform_1, window_bounds = array<i64: 8, 128>}]} {
    %c0 = arith.constant 0 : index
    %c0_0 = arith.constant 0 : index
    %0 = vector.load %arg1[%c0, %c0_0] : memref<8x128xf32, #tpu.memory_space<vmem>>, vector<8x128xf32>
    %cst = arith.constant 0.000000e+00 : f32
    %1 = vector.broadcast %cst : f32 to vector<8x128xf32>
    %2 = arith.maximumf %0, %1 : vector<8x128xf32>
    %3 = arith.subf %2, %0 : vector<8x128xf32>
    %4 = arith.addf %3, %0 : vector<8x128xf32>
    %5 = arith.addf %2, %4 : vector<8x128xf32>
    %cst_1 = arith.constant 5.000000e-01 : f32
    %6 = vector.broadcast %cst_1 : f32 to vector<8x128xf32>
    %7 = arith.mulf %6, %5 : vector<8x128xf32>
    %8 = arith.subf %5, %7 : vector<8x128xf32>
    %c0_2 = arith.constant 0 : index
    %c0_3 = arith.constant 0 : index
    %9 = vector.load %arg2[%c0_2, %c0_3] : memref<8x128xf32, #tpu.memory_space<vmem>>, vector<8x128xf32>
    tpu.vector_store %arg2[%c0_2, %c0_3], %8 {strides = array<i32>} : memref<8x128xf32, #tpu.memory_space<vmem>>, vector<8x128xf32>,
    return
  }
  func.func @transform_0(%arg0: i32) -> (i32, i32) {
    %c0_i32 = arith.constant 0 : i32
    %c0_i32_0 = arith.constant 0 : i32
    return %arg0, %c0_i32 : i32, i32
  }
  func.func @transform_1(%arg0: i32) -> (i32, i32) {
    %c0_i32 = arith.constant 0 : i32
    %c0_i32_0 = arith.constant 0 : i32
    return %arg0, %c0_i32 : i32, i32
  }
}

</mosaic_0001>

<bundles_post_ra>
// kernel: tpu_custom_call.1
= control target key start
LH: loop header
LB: loop body
LE: loop exit
PB: predicated region body
PF: predicated region fallthrough
CT: control target
= control target key end

     0   :  { %6 = vsyncpa [#allocation3], 0  ;;  %s521_s0 = inlined_call_operand.hbm [shape: f32[16,128], index: 0, kind: input, shape index: {}]   ;;  %s522_s1 = inlined_call_operand.hbm [shape: f32[16,128], index: 1, kind: output, shape index: {}]  }
   0x1   :  { %8 = vsyncpa [#allocation3 + $0x1], 0 }
   0x2   :  { %9 = vsyncpa [#allocation4], 0 }
   0x3   :  { %11 = vsyncpa [#allocation4 + $0x1], 0  ;;  %s394_s6 = smov 0   ;;  %s396_s7 = smov 0  }
   0x4   :  { %s398_s8 = smov 0   ;;  %s400_s9 = smov 0  }
   0x5 LB: > { %s415_s10 = sadd.s32 4294967295, %s382_s9   ;;  %s228_s11 = sadd.s32 4294967294, %s382_s9   ;;  %s382_s9 = sphi %s400_s9, %s532_s9   ;;  %s378_s8 = sphi %s398_s8, %s531_s8   ;;  %s374_s7 = sphi %s396_s7, %s530_s7   ;;  %s370_s6 = sphi %s394_s6, %s529_s6  }
   0x6   : > { %s419_s12 = sadd.s32 1, %s382_s9   ;;  %s24_s13 = sadd.s32 1, %s378_s8 }
   0x7   : > { %s21_s14 = ssub.s32 %s382_s9, %s419_s12  ;;  %p31_p0 = scmp.ne.s32.totalorder %s378_s8, %s374_s7 }
   0x8   : > { %p22_p1 = scmp.eq.s32.totalorder %s21_s14, 0  ;;  %p32_p2 = scmp.eq.s32.totalorder %s382_s9, 0 }
   0x9   : > { %p37_p3 = scmp.ne.s32.totalorder %s374_s7, %s370_s6  ;;  %p38_p4 = scmp.eq.s32.totalorder %s415_s10, 0 }
   0xa   : > { %s431_s15 = scalar_select %p22_p1, %s378_s8, %s24_s13  }
   0xb   : > { %p433_p5 = por %p32_p2, %p31_p0  ;;  %p437_p6 = por %p38_p4, %p37_p3 }
   0xc   : > { %p61_p7 = scmp.eq.s32.totalorder %s415_s10, 1  ;;  %p67_p8 = scmp.eq.s32.totalorder %s228_s11, 1 }
   0xd   : > { %p252_p10 = scmp.lt.s32.totalorder %s382_s9, 2  ;;  %s87_s20 = sand.u32 1, %s378_s8  }
   0xe   : > { %p444_p11 = por %p61_p7, %p31_p0  ;;  %p448_p12 = por %p67_p8, %p37_p3 }
   0xf   : > { %s232_s21 = sshll.u32 %s382_s9, 3  ;;  %s231_s22 = sshll.u32 %s87_s20, 3 }
  0x10   : > { %s95_s25 = scalar_lea.hbm %s521_s0, %s232_s21  ;;  %s91_s27 = scalar_lea.vmem [#allocation2], %s231_s22 }
  0x11   : > { %s97_s26 = sshll.u32 %s95_s25, 4  ;;  %s99_s28 = sshll.u32 %s91_s27, 4  ;;  %s98_s26 = int_to_ptr.hbm [resolvable:$true] %s97_s26  ;;  %s100_s28 = int_to_ptr.vmem [resolvable:$true] %s99_s28 }
  0x12   : > { %p459_p13 = pnand %p252_p10, %p433_p5  ;;  %p233_p0 = scmp.ge.s32.totalorder %s382_s9, 1 }
  0x13   : > { %p104_p1 = scmp.lt.s32.totalorder %s382_s9, 3  ;;  %s88_s30 = scalar_lea.sflag [#allocation3], %s87_s20 }
  0x14   : > { %s286_s2 = sshra.s32 %s98_s26, 4  ;;  %p290_p3 = pneg %p459_p13  ;;  %s287_s2 = int_to_ptr.hbm [resolvable:$true] %s286_s2 }
  0x15   : > { %s288_s3 = scalar_lea.hbm %s287_s2, 8  ;;  %s293_s11 = scalar_lea.hbm %s521_s0, 16 }
  0x16   : > { %p289_p2 = scmp.ne.s32.totalorder %s287_s2, %s288_s3  ;;  %p294_p5 = scmp.lt.s32.totalorder %s287_s2, %s521_s0 }
  0x17   : > { %p295_p8 = scmp.lt.s32.totalorder %s293_s11, %s288_s3 }
  0x18   : > { %p291_p4 = pnand %p290_p3, %p289_p2 }
  0x19   : > { %p296_p10 = por %p295_p8, %p294_p5 }
  0x1a   : > { %p292_p7 = pneg %p291_p4 }
  0x1c   : > { %p297_p9 = pnand %p296_p10, %p292_p7 }
  0x1e   : > { %300 = shalt.err (!%p297_p9)
}
  0x1f   : > { %247 = dma.hbm_to_vmem [thread:$0]  (!%p459_p13), %s98_s26, 128, %s100_s28, %s88_s30  }
  0x20   : > { %p105_p2 = pnand %p233_p0, %p104_p1 }
  0x21   : > { %s480_s16 = sand.u32 (!%p105_p2), 1, %s374_s7  }
  0x22   : > { %108 = sbr.rel (%p105_p2) target bundleno = 56 (0x38), region = 24  ;;  %s234_s20 = sshll.u32 (!%p105_p2), %s480_s16, 3 }
  0x23   : > { %s111_s21 = scalar_lea.sflag (!%p105_p2), [#allocation3], %s480_s16  ;;  %s114_s22 = scalar_lea.vmem (!%p105_p2), [#allocation2], %s234_s20 }
  0x27   : > { %361 = dma.done.wait (%p437_p6), %s111_s21, 128  }
  0x28   : > { %363 = vsyncadd (%p437_p6), %s111_s21, 4294967168  ;;  %v134_v0 = vld [vmem:[%s114_s22] sm:$0xff]  ;;  %s237_s23 = sshll.u32 %s415_s10, 3  ;;  %s133_s27 = scalar_lea.vmem [#allocation5], %s234_s20 }
  0x29   : > { %v135_v1 = vmax.f32 %v134_v0, 0.0  ;;  %s153_s26 = scalar_lea.hbm %s522_s1, %s237_s23  ;;  %s155_s28 = sshll.u32 %s133_s27, 4  ;;  %s156_s28 = int_to_ptr.vmem [resolvable:$true] %s155_s28 }
  0x2a   : > { %s157_s29 = sshll.u32 %s153_s26, 4  ;;  %s143_s17 = scalar_lea.sflag [#allocation4], %s480_s16  ;;  %s158_s29 = int_to_ptr.hbm [resolvable:$true] %s157_s29 }
  0x2b   : > { %v136_v2 = vsub.f32 %v135_v1, %v134_v0  ;;  %s330_s30 = sshra.s32 %s158_s29, 4  ;;  %s336_s4 = scalar_lea.hbm %s522_s1, 16  ;;  %s331_s30 = int_to_ptr.hbm [resolvable:$true] %s330_s30 }
  0x2c   : > { %s332_s10 = scalar_lea.hbm %s331_s30, 8  ;;  %p337_p0 = scmp.lt.s32.totalorder %s331_s30, %s522_s1 }
  0x2d   : > { %v137_v3 = vadd.f32 %v136_v2, %v134_v0  ;;  %p333_p6 = scmp.ne.s32.totalorder %s331_s30, %s332_s10  ;;  %p338_p1 = scmp.lt.s32.totalorder %s336_s4, %s332_s10 }
  0x2f   : > { %v138_v4 = vadd.f32 %v137_v3, %v135_v1  ;;  %p334_p9 = pnand %p333_p6, %p444_p11  ;;  %p339_p3 = por %p338_p1, %p337_p0 }
  0x31   : > { %v139_v5 = vmul.f32 0.5, %v138_v4  ;;  %p335_p13 = pneg %p334_p9 }
  0x33   : > { %v140_v6 = vsub.f32 %v138_v4, %v139_v5  ;;  %p340_p4 = pnand %p339_p3, %p335_p13 }
  0x35   : > { %141 = vst [vmem:[%s133_s27] sm:$0xff] %v140_v6 }
  0x36   : > { %343 = shalt.err (!%p340_p4)
}
  0x37   : > { %242 = dma.vmem_to_hbm [thread:$0]  (%p444_p11), %s156_s28, 128, %s158_s29, %s143_s17  }
  0x38 PF: > { %s169_s13 = sand.u32 1, %s370_s6   ;;  %p528_p7 = scmp.ge.s32.totalorder %s382_s9, 2 }
  0x39   : > { %s170_s14 = scalar_lea.sflag [#allocation4], %s169_s13 }
  0x3a   : > { %p249_p5 = pnand %p528_p7, %p448_p12 }
  0x3c   : > { %p250_p8 = pneg %p249_p5 }
  0x3e   : > { %365 = dma.done.wait (%p250_p8), %s170_s14, 128  }
  0x3f   : > { %367 = vsyncadd (%p250_p8), %s170_s14, 4294967168  ;;  %p14_p10 = scmp.ge.s32.totalorder %s419_s12, 4   ;;  %s529_s6 = smov %s374_s7 }
  0x40   : > { %s530_s7 = smov %s378_s8  ;;  %s531_s8 = smov %s431_s15 }
  0x41   : > { %s532_s9 = smov %s419_s12  ;;  %16 = sbr.rel (!%p14_p10) target bundleno = 5 (0x5), region = 69 }
  0x46   :  { %176 = vsyncpa [#allocation3], 1 }
  0x47   :  { %178 = vsyncpa [#allocation3 + $0x1], 1 }
  0x48   :  { %179 = vsyncpa [#allocation4], 1 }
  0x49   :  { %181 = vsyncpa [#allocation4 + $0x1], 1 }

</bundles_post_ra>
